<compile_context>
chip_gen: v7x
topology: tpu7x:2x2x1
jax: 0.10.0
libtpu: 0.0.40
codegen_flags: <defaults>
</compile_context>

<pallas_src>
import functools

import jax
import jax.numpy as jnp
import numpy as np
from jax.experimental import pallas as pl
from jax.experimental.pallas import tpu as pltpu


# ---------------------------------------------------------------------------
# Fused kernel: whole batch in one invocation, lanes = B*H*W.
# ---------------------------------------------------------------------------
def _decoder_fused_kernel(x_ref, mask_ref, w1_ref, b1_ref, wt_ref, b2_ref,
                          w2_ref, b3_ref, o_ref, *, shifts, W):
    N = x_ref.shape[1]                         # B*H*W (lane axis)
    mid = w1_ref.shape[0]
    cout = w2_ref.shape[0]
    Pp = wt_ref.shape[0] // mid

    # conv1 (1x1) + folded BN + ReLU :  [mid, Cin] @ [Cin, N]  (bf16 -> f32 acc)
    y = jnp.dot(w1_ref[...], x_ref[...], preferred_element_type=jnp.float32)
    y = jnp.maximum(y + b1_ref[...], 0.0)      # [mid, N] f32

    # ConvTranspose2d via sub-pixel decomposition -- single concatenated matmul.
    # ys_si[:, b*HW + r*W + c] = y[:, b*HW + (r-dh)*W + (c-dw)], zero off-image.
    ys_list = []
    for si, (dh, dw) in enumerate(shifts):     # static unroll (<= 4 shifts)
        if (dh, dw) == (0, 0):
            ys = y
        else:
            ys = pltpu.roll(y, shift=(dh * W + dw) % N, axis=1)
            ys = ys * mask_ref[si:si + 1, :]   # (1, N) mask broadcast on sublanes
        ys_list.append(ys)
    ys_cat = jnp.concatenate(ys_list, axis=0).astype(jnp.bfloat16)  # [ns*mid, N]

    acc = jnp.dot(wt_ref[...], ys_cat, preferred_element_type=jnp.float32)
    z = jnp.maximum(acc + b2_ref[...], 0.0)    # [Pp*mid, N] f32
    z_bf = z.astype(jnp.bfloat16)

    # conv2 (1x1) + folded BN + ReLU: same [cout, mid] weight per parity slab.
    w2 = w2_ref[...]
    b3 = b3_ref[...]
    for p_idx in range(Pp):                    # static unroll (Pp = stride^2)
        zp = z_bf[p_idx * mid:(p_idx + 1) * mid, :]
        op = jnp.dot(w2, zp, preferred_element_type=jnp.float32)
        o_ref[p_idx * cout:(p_idx + 1) * cout, :] = jnp.maximum(op + b3, 0.0)


# ---------------------------------------------------------------------------
# Trace-time weight preparation: BN folding + sub-pixel tap packing (bf16).
# ---------------------------------------------------------------------------
def build_fused_params(prm):
    K, s, p = prm["K"], prm["stride"], prm["padding"]
    mid = prm["w1"].shape[0]
    cout = prm["w2"].shape[0]
    Pp = s * s

    # conv1: fold BN scale into output-channel rows.
    w1f = (prm["w1"] * prm["s1"][:, None]).astype(jnp.bfloat16)     # [mid, Cin]
    b1c = prm["b1"].reshape(mid, 1).astype(jnp.float32)

    # Enumerate the distinct (dh, dw) input shifts needed across all parities.
    shifts = set()
    for ph in range(s):
        for kh in range(K):
            if (kh - ph - p) % s:
                continue
            dh = (kh - ph - p) // s
            for pw in range(s):
                for kw in range(K):
                    if (kw - pw - p) % s:
                        continue
                    dw = (kw - pw - p) // s
                    shifts.add((dh, dw))
    shifts = sorted(shifts)

    # One packed tconv weight [Pp*mid, n_shifts*mid]:
    # rows p*mid + co (parity-major), cols si*mid + ci (shift-major).
    wt, s2 = prm["wt"], prm["s2"]                                   # wt: [ci, co, K, K]
    w_shift = []
    for (dh, dw) in shifts:
        blocks = []
        for ph in range(s):
            for pw in range(s):
                kh = s * dh + ph + p
                kw = s * dw + pw + p
                if 0 <= kh < K and 0 <= kw < K:
                    blk = wt[:, :, kh, kw].T * s2[:, None]          # [co, ci], BN folded
                else:
                    blk = jnp.zeros((mid, mid), jnp.float32)
                blocks.append(blk)
        w_shift.append(jnp.concatenate(blocks, axis=0))             # [Pp*mid, mid]
    wt_cat = jnp.concatenate(w_shift, axis=1).astype(jnp.bfloat16)  # [Pp*mid, ns*mid]
    b2s = jnp.tile(prm["b2"], Pp).reshape(Pp * mid, 1).astype(jnp.float32)

    # conv2: BN folded; single [cout, mid] weight reused per parity (no kron).
    w2f = (prm["w2"] * prm["s3"][:, None]).astype(jnp.bfloat16)
    b3c = prm["b3"].reshape(cout, 1).astype(jnp.float32)

    return shifts, w1f, b1c, wt_cat, b2s, w2f, b3c


def build_shift_masks(shifts, B, H, W):
    """Host-side per-shift validity masks over the lane axis (B*H*W)."""
    HW = H * W
    N = B * HW
    q = np.arange(N, dtype=np.int64) % HW
    row, col = q // W, q % W
    masks = []
    for (dh, dw) in shifts:
        valid = ((row - dh >= 0) & (row - dh < H) &
                 (col - dw >= 0) & (col - dw < W))
        masks.append(valid.astype(np.float32))
    return jnp.asarray(np.stack(masks, axis=0))                     # [n_shifts, N]


# ---------------------------------------------------------------------------
# Decoder forward (fused single pallas_call)
# ---------------------------------------------------------------------------
def decoder_forward(x_nchw, prm):
    B, Cin, H, W = x_nchw.shape
    K, s, p, op = prm["K"], prm["stride"], prm["padding"], prm["out_padding"]
    cout = prm["w2"].shape[0]
    Ho = (H - 1) * s - 2 * p + K + op
    Wo = (W - 1) * s - 2 * p + K + op
    if Ho != s * H or Wo != s * W:
        # TODO(synk): non-exact-upsample ConvTranspose configs need the
        # zero-dilated fallback path; not implemented here.
        raise NotImplementedError(
            "sub-pixel path requires K + out_pad == 2*pad + stride")

    HW = H * W
    N = B * HW
    Pp = s * s
    shifts, w1f, b1c, wt_cat, b2s, w2f, b3c = build_fused_params(prm)
    masks = build_shift_masks(shifts, B, H, W)

    # Channels-first flat layout, batch folded into lanes; bf16 MXU operands.
    x_flat = jnp.transpose(x_nchw.reshape(B, Cin, HW), (1, 0, 2)) \
                .reshape(Cin, N).astype(jnp.bfloat16)

    kern = functools.partial(_decoder_fused_kernel, shifts=tuple(shifts), W=W)
    vmem = pl.BlockSpec(memory_space=pltpu.MemorySpace.VMEM)
    o_flat = pl.pallas_call(
        kern,
        out_shape=jax.ShapeDtypeStruct((Pp * cout, N), jnp.float32),
        in_specs=[vmem] * 8,
        out_specs=vmem,
    )(x_flat, masks, w1f, b1c, wt_cat, b2s, w2f, b3c)

    # Depth-to-space: rows are (ph, pw, co), lanes are (b, i, j).
    # TODO(synk): in a full LinkNet this parity-major layout would be kept for
    # the next fused block (skip-add / next decoder), avoiding this HBM pass.
    o = o_flat.reshape(s, s, cout, B, H, W)
    o = jnp.transpose(o, (3, 2, 4, 0, 5, 1))   # [B, co, i, ph, j, pw]
    return o.reshape(B, cout, Ho, Wo)          # NCHW, like PyTorch


# ---------------------------------------------------------------------------
# Pure-JAX (XLA) reference for correctness check (f32 end-to-end)
# ---------------------------------------------------------------------------
def decoder_reference(x, prm):
    K, s, p, op = prm["K"], prm["stride"], prm["padding"], prm["out_padding"]
    relu = lambda v: jnp.maximum(v, 0.0)
    bn = lambda v, sc, bi: v * sc.reshape(1, -1, 1, 1) + bi.reshape(1, -1, 1, 1)

    y = jnp.einsum("bchw,mc->bmhw", x, prm["w1"])
    y = relu(bn(y, prm["s1"], prm["b1"]))

    # ConvTranspose2d == lhs-dilated conv with spatially flipped, in/out-swapped kernel.
    w_conv = jnp.transpose(jnp.flip(prm["wt"], axis=(2, 3)), (1, 0, 2, 3))  # OIHW
    z = jax.lax.conv_general_dilated(
        y, w_conv, window_strides=(1, 1),
        padding=[(K - 1 - p, K - 1 - p + op)] * 2,
        lhs_dilation=(s, s),
        dimension_numbers=("NCHW", "OIHW", "NCHW"))
    z = relu(bn(z, prm["s2"], prm["b2"]))

    o = jnp.einsum("bchw,oc->bohw", z, prm["w2"])
    return relu(bn(o, prm["s3"], prm["b3"]))


# ---------------------------------------------------------------------------
def make_params(key, in_planes, out_planes, K, stride, padding, out_padding):
    mid = in_planes // 4
    ks = jax.random.split(key, 9)
    eps = 1e-5

    def bn_fold(kg, kb, c):
        gamma = 1.0 + 0.1 * jax.random.normal(kg, (c,), jnp.float32)
        beta = 0.1 * jax.random.normal(kb, (c,), jnp.float32)
        run_mean = jnp.zeros((c,), jnp.float32)   # PyTorch-default running stats
        run_var = jnp.ones((c,), jnp.float32)
        scale = gamma / jnp.sqrt(run_var + eps)   # general eval-mode fold:
        bias = beta - run_mean * scale            # beta - gamma*mean/sqrt(var+eps)
        return scale, bias

    w1 = 0.1 * jax.random.normal(ks[0], (mid, in_planes), jnp.float32)      # Conv2d [out, in]
    wt = 0.1 * jax.random.normal(ks[1], (mid, mid, K, K), jnp.float32)      # ConvT [in, out, kH, kW]
    w2 = 0.1 * jax.random.normal(ks[2], (out_planes, mid), jnp.float32)     # Conv2d [out, in]
    s1, b1 = bn_fold(ks[3], ks[4], mid)
    s2, b2 = bn_fold(ks[5], ks[6], mid)
    s3, b3 = bn_fold(ks[7], ks[8], out_planes)
    return dict(w1=w1, wt=wt, w2=w2, s1=s1, b1=b1, s2=s2, b2=b2, s3=s3, b3=b3,
                K=K, stride=stride, padding=padding, out_padding=out_padding)


if __name__ == "__main__":
    # Decoder(in_planes=16, out_planes=8, kernel_size=3, stride=2,
    #         padding=1, output_padding=1) -- typical LinkNet decoder block.
    in_planes, out_planes = 16, 8
    K, stride, padding, out_padding = 3, 2, 1, 1
    B, H, W = 2, 16, 16

    key = jax.random.PRNGKey(0)
    kx, kp = jax.random.split(key)
    x = jax.random.normal(kx, (B, in_planes, H, W), jnp.float32)   # NCHW, like PyTorch
    prm = make_params(kp, in_planes, out_planes, K, stride, padding, out_padding)

    out = jax.block_until_ready(decoder_forward(x, prm))
    ref = jax.block_until_ready(decoder_reference(x, prm))

    assert out.shape == (B, out_planes, 2 * H, 2 * W), out.shape
    # bf16 MXU operands (f32 accumulation) vs an all-f32 reference -> relaxed tol.
    np.testing.assert_allclose(np.asarray(out), np.asarray(ref), rtol=2e-2, atol=2e-2)

    print("KERNEL_OK")
</pallas_src>

<mosaic_0001>
module attributes {stable_mosaic.version = 11 : i64} {
  func.func @_decoder_fused_kernel(%arg0: memref<16x512xbf16, #tpu.memory_space<vmem>>, %arg1: memref<4x512xf32, #tpu.memory_space<vmem>>, %arg2: memref<4x16xbf16, #tpu.memory_space<vmem>>, %arg3: memref<4x1xf32, #tpu.memory_space<vmem>>, %arg4: memref<16x16xbf16, #tpu.memory_space<vmem>>, %arg5: memref<16x1xf32, #tpu.memory_space<vmem>>, %arg6: memref<8x4xbf16, #tpu.memory_space<vmem>>, %arg7: memref<8x1xf32, #tpu.memory_space<vmem>>, %arg8: memref<32x512xf32, #tpu.memory_space<vmem>>) attributes {dimension_semantics = [], scalar_prefetch = 0 : i64, scratch_operands = 0 : i64, tpu.core_type = #tpu.core_type<tc>} {
    %c0 = arith.constant 0 : index
    %c0_0 = arith.constant 0 : index
    %0 = vector.load %arg2[%c0, %c0_0] : memref<4x16xbf16, #tpu.memory_space<vmem>>, vector<4x16xbf16>
    %c0_1 = arith.constant 0 : index
    %c0_2 = arith.constant 0 : index
    %1 = vector.load %arg0[%c0_1, %c0_2] : memref<16x512xbf16, #tpu.memory_space<vmem>>, vector<16x512xbf16>
    %cst = arith.constant dense<0.000000e+00> : vector<4x512xf32>
    %2 = tpu.matmul %0, %1, %cst {dimension_numbers = #tpu.dot_dimension_numbers<[1], [0], [0], [1], [0, 0, 1, 1], [], []>} : vector<4x16xbf16>, vector<16x512xbf16>, vector<4x512xf32> -> vector<4x512xf32>
    %c0_3 = arith.constant 0 : index
    %c0_4 = arith.constant 0 : index
    %3 = vector.load %arg3[%c0_3, %c0_4] : memref<4x1xf32, #tpu.memory_space<vmem>>, vector<4x1xf32>
    %4 = vector.broadcast %3 : vector<4x1xf32> to vector<4x512xf32>
    %5 = arith.addf %2, %4 : vector<4x512xf32>
    %cst_5 = arith.constant 0.000000e+00 : f32
    %6 = vector.broadcast %cst_5 : f32 to vector<4x512xf32>
    %7 = arith.maximumf %5, %6 : vector<4x512xf32>
    %c495_i32 = arith.constant 495 : i32
    %8 = tpu.dynamic_rotate %7 by %c495_i32 dim 1 : vector<4x512xf32>, i32 -> vector<4x512xf32>
    %c0_6 = arith.constant 0 : index
    %c0_7 = arith.constant 0 : index
    %9 = vector.load %arg1[%c0_6, %c0_7] : memref<4x512xf32, #tpu.memory_space<vmem>>, vector<1x512xf32>
    %10 = vector.broadcast %9 : vector<1x512xf32> to vector<4x512xf32>
    %11 = arith.mulf %8, %10 : vector<4x512xf32>
    %c496_i32 = arith.constant 496 : i32
    %12 = tpu.dynamic_rotate %7 by %c496_i32 dim 1 : vector<4x512xf32>, i32 -> vector<4x512xf32>
    %c1 = arith.constant 1 : index
    %c0_8 = arith.constant 0 : index
    %13 = vector.load %arg1[%c1, %c0_8] : memref<4x512xf32, #tpu.memory_space<vmem>>, vector<1x512xf32>
    %14 = vector.broadcast %13 : vector<1x512xf32> to vector<4x512xf32>
    %15 = arith.mulf %12, %14 : vector<4x512xf32>
    %c511_i32 = arith.constant 511 : i32
    %16 = tpu.dynamic_rotate %7 by %c511_i32 dim 1 : vector<4x512xf32>, i32 -> vector<4x512xf32>
    %c2 = arith.constant 2 : index
    %c0_9 = arith.constant 0 : index
    %17 = vector.load %arg1[%c2, %c0_9] : memref<4x512xf32, #tpu.memory_space<vmem>>, vector<1x512xf32>
    %18 = vector.broadcast %17 : vector<1x512xf32> to vector<4x512xf32>
    %19 = arith.mulf %16, %18 : vector<4x512xf32>
    %20 = tpu.concatenate %11, %15, %19, %7 in 0 : vector<4x512xf32>, vector<4x512xf32>, vector<4x512xf32>, vector<4x512xf32> -> vector<16x512xf32>
    %21 = arith.truncf %20 : vector<16x512xf32> to vector<16x512xbf16>
    %c0_10 = arith.constant 0 : index
    %c0_11 = arith.constant 0 : index
    %22 = vector.load %arg4[%c0_10, %c0_11] : memref<16x16xbf16, #tpu.memory_space<vmem>>, vector<16x16xbf16>
    %cst_12 = arith.constant dense<0.000000e+00> : vector<16x512xf32>
    %23 = tpu.matmul %22, %21, %cst_12 {dimension_numbers = #tpu.dot_dimension_numbers<[1], [0], [0], [1], [0, 0, 1, 1], [], []>} : vector<16x16xbf16>, vector<16x512xbf16>, vector<16x512xf32> -> vector<16x512xf32>
    %c0_13 = arith.constant 0 : index
    %c0_14 = arith.constant 0 : index
    %24 = vector.load %arg5[%c0_13, %c0_14] : memref<16x1xf32, #tpu.memory_space<vmem>>, vector<16x1xf32>
    %25 = vector.broadcast %24 : vector<16x1xf32> to vector<16x512xf32>
    %26 = arith.addf %23, %25 : vector<16x512xf32>
    %cst_15 = arith.constant 0.000000e+00 : f32
    %27 = vector.broadcast %cst_15 : f32 to vector<16x512xf32>
    %28 = arith.maximumf %26, %27 : vector<16x512xf32>
    %29 = arith.truncf %28 : vector<16x512xf32> to vector<16x512xbf16>
    %c0_16 = arith.constant 0 : index
    %c0_17 = arith.constant 0 : index
    %30 = vector.load %arg6[%c0_16, %c0_17] : memref<8x4xbf16, #tpu.memory_space<vmem>>, vector<8x4xbf16>
    %c0_18 = arith.constant 0 : index
    %c0_19 = arith.constant 0 : index
    %31 = vector.load %arg7[%c0_18, %c0_19] : memref<8x1xf32, #tpu.memory_space<vmem>>, vector<8x1xf32>
    %32 = vector.extract_strided_slice %29 {offsets = [0, 0], sizes = [4, 512], strides = [1, 1]} : vector<16x512xbf16> to vector<4x512xbf16>
    %cst_20 = arith.constant dense<0.000000e+00> : vector<8x512xf32>
    %33 = tpu.matmul %30, %32, %cst_20 {dimension_numbers = #tpu.dot_dimension_numbers<[1], [0], [0], [1], [0, 0, 1, 1], [], []>} : vector<8x4xbf16>, vector<4x512xbf16>, vector<8x512xf32> -> vector<8x512xf32>
    %34 = vector.broadcast %31 : vector<8x1xf32> to vector<8x512xf32>
    %35 = arith.addf %33, %34 : vector<8x512xf32>
    %cst_21 = arith.constant 0.000000e+00 : f32
    %36 = vector.broadcast %cst_21 : f32 to vector<8x512xf32>
    %37 = arith.maximumf %35, %36 : vector<8x512xf32>
    %c0_22 = arith.constant 0 : index
    %c0_23 = arith.constant 0 : index
    %38 = vector.load %arg8[%c0_22, %c0_23] : memref<32x512xf32, #tpu.memory_space<vmem>>, vector<8x512xf32>
    tpu.vector_store %arg8[%c0_22, %c0_23], %37 {strides = array<i32>} : memref<32x512xf32, #tpu.memory_space<vmem>>, vector<8x512xf32>,
    %39 = vector.extract_strided_slice %29 {offsets = [4, 0], sizes = [4, 512], strides = [1, 1]} : vector<16x512xbf16> to vector<4x512xbf16>
    %cst_24 = arith.constant dense<0.000000e+00> : vector<8x512xf32>
    %40 = tpu.matmul %30, %39, %cst_24 {dimension_numbers = #tpu.dot_dimension_numbers<[1], [0], [0], [1], [0, 0, 1, 1], [], []>} : vector<8x4xbf16>, vector<4x512xbf16>, vector<8x512xf32> -> vector<8x512xf32>
    %41 = vector.broadcast %31 : vector<8x1xf32> to vector<8x512xf32>
    %42 = arith.addf %40, %41 : vector<8x512xf32>
    %cst_25 = arith.constant 0.000000e+00 : f32
    %43 = vector.broadcast %cst_25 : f32 to vector<8x512xf32>
    %44 = arith.maximumf %42, %43 : vector<8x512xf32>
    %c8 = arith.constant 8 : index
    %c0_26 = arith.constant 0 : index
    %45 = vector.load %arg8[%c8, %c0_26] : memref<32x512xf32, #tpu.memory_space<vmem>>, vector<8x512xf32>
    tpu.vector_store %arg8[%c8, %c0_26], %44 {strides = array<i32>} : memref<32x512xf32, #tpu.memory_space<vmem>>, vector<8x512xf32>,
    %46 = vector.extract_strided_slice %29 {offsets = [8, 0], sizes = [4, 512], strides = [1, 1]} : vector<16x512xbf16> to vector<4x512xbf16>
    %cst_27 = arith.constant dense<0.000000e+00> : vector<8x512xf32>
    %47 = tpu.matmul %30, %46, %cst_27 {dimension_numbers = #tpu.dot_dimension_numbers<[1], [0], [0], [1], [0, 0, 1, 1], [], []>} : vector<8x4xbf16>, vector<4x512xbf16>, vector<8x512xf32> -> vector<8x512xf32>
    %48 = vector.broadcast %31 : vector<8x1xf32> to vector<8x512xf32>
    %49 = arith.addf %47, %48 : vector<8x512xf32>
    %cst_28 = arith.constant 0.000000e+00 : f32
    %50 = vector.broadcast %cst_28 : f32 to vector<8x512xf32>
    %51 = arith.maximumf %49, %50 : vector<8x512xf32>
    %c16 = arith.constant 16 : index
    %c0_29 = arith.constant 0 : index
    %52 = vector.load %arg8[%c16, %c0_29] : memref<32x512xf32, #tpu.memory_space<vmem>>, vector<8x512xf32>
    tpu.vector_store %arg8[%c16, %c0_29], %51 {strides = array<i32>} : memref<32x512xf32, #tpu.memory_space<vmem>>, vector<8x512xf32>,
    %53 = vector.extract_strided_slice %29 {offsets = [12, 0], sizes = [4, 512], strides = [1, 1]} : vector<16x512xbf16> to vector<4x512xbf16>
    %cst_30 = arith.constant dense<0.000000e+00> : vector<8x512xf32>
    %54 = tpu.matmul %30, %53, %cst_30 {dimension_numbers = #tpu.dot_dimension_numbers<[1], [0], [0], [1], [0, 0, 1, 1], [], []>} : vector<8x4xbf16>, vector<4x512xbf16>, vector<8x512xf32> -> vector<8x512xf32>
    %55 = vector.broadcast %31 : vector<8x1xf32> to vector<8x512xf32>
    %56 = arith.addf %54, %55 : vector<8x512xf32>
    %cst_31 = arith.constant 0.000000e+00 : f32
    %57 = vector.broadcast %cst_31 : f32 to vector<8x512xf32>
    %58 = arith.maximumf %56, %57 : vector<8x512xf32>
    %c24 = arith.constant 24 : index
    %c0_32 = arith.constant 0 : index
    %59 = vector.load %arg8[%c24, %c0_32] : memref<32x512xf32, #tpu.memory_space<vmem>>, vector<8x512xf32>
    tpu.vector_store %arg8[%c24, %c0_32], %58 {strides = array<i32>} : memref<32x512xf32, #tpu.memory_space<vmem>>, vector<8x512xf32>,
    return
  }
}

</mosaic_0001>

<bundles_post_ra>
// kernel: tpu_custom_call.1
= control target key start
LH: loop header
LB: loop body
LE: loop exit
PB: predicated region body
PF: predicated region fallthrough
CT: control target
= control target key end

     0   :  { %13 = vsyncpa [#allocation3], 0  ;;  %s1199_s0 = inlined_call_operand.vmem [shape: bf16[16,512], index: 0, kind: input, shape index: {}]   ;;  %s1200_s1 = inlined_call_operand.hbm [shape: f32[4,512], index: 1, kind: input, shape index: {}]   ;;  %s1201_s2 = inlined_call_operand.vmem [shape: bf16[4,16], index: 2, kind: input, shape index: {}]   ;;  %s1202_s3 = inlined_call_operand.vmem [shape: f32[4,1], index: 3, kind: input, shape index: {}]   ;;  %s1203_s4 = inlined_call_operand.vmem [shape: bf16[16,16], index: 4, kind: input, shape index: {}]   ;;  %s1204_s5 = inlined_call_operand.vmem [shape: f32[16,1], index: 5, kind: input, shape index: {}]   ;;  %s1205_s6 = inlined_call_operand.vmem [shape: bf16[8,4], index: 6, kind: input, shape index: {}]   ;;  %s1206_s7 = inlined_call_operand.vmem [shape: f32[8,1], index: 7, kind: input, shape index: {}]   ;;  %s1207_s8 = inlined_call_operand.hbm [shape: f32[32,512], index: 8, kind: output, shape index: {}]  }
   0x1   :  { %14 = vsyncpa [#allocation4], 0  ;;  %s985_s27 = smov [#allocation2]   ;;  %s937_s9 = scalar_lea.hbm %s1200_s1, 256 }
   0x2   :  { %s23_s28 = sshll.u32 %s985_s27, 4  ;;  %p938_p0 = scmp.ne.s32.totalorder %s1200_s1, %s937_s9  ;;  %s24_s28 = int_to_ptr.vmem [resolvable:$true] %s23_s28 }
   0x3   :  { %p941_p1 = scmp.lt.u32.totalorder %s937_s9, %s1200_s1 }
   0x5   :  { %p943_p2 = pnand %p941_p1, %p938_p0 }
   0x7   :  { %946 = shalt.err (!%p943_p2)
}
   0x8   :  { %s947_s14 = scalar_lea.vmem %s24_s28, 256  ;;  %p952_p4 = scmp.lt.s32.totalorder %s24_s28, %s24_s28 }
   0x9   :  { %p948_p3 = scmp.ne.s32.totalorder %s24_s28, %s947_s14  ;;  %p953_p5 = scmp.lt.s32.totalorder %s947_s14, %s947_s14 }
   0xb   :  { %p954_p6 = por %p953_p5, %p952_p4 }
   0xd   :  { %p955_p7 = pnand %p954_p6, %p948_p3 }
   0xf   :  { %958 = shalt.err (!%p955_p7)
}
  0x10   :  { %26 = dma.hbm_to_vmem [thread:$0]  %s1200_s1, 256, %s24_s28, [#allocation3]  }
  0x11   :  { %981 = dma.done.wait [#allocation3], 256  }
  0x12   :  { %982 = vsyncadd [#allocation3], 4294967040  ;;  %v986_v0 = vmov 0   ;;  %v930_v1 = vld [vmem:[%s1199_s0 + $0x4] ss:$16 sps:$4 sm:$0xff]   ;;  %vm74_vm0 = vcmask 130048   ;;  %v172_v27 = vlaneseq }
  0x13   :  { %110 = vmatprep.mubr.bf16.mxu0 %v986_v0  ;;  %151 = vmatprep.mubr.bf16.mxu1 %v986_v0  ;;  %v932_v2 = vld [vmem:[%s1199_s0 + $0xc] ss:$16 sps:$4 sm:$0xff]   ;;  %v934_v3 = vld [vmem:[%s1199_s0] ss:$16 sps:$4 sm:$0xff]   ;;  %v935_v4 = vld [vmem:[%s1199_s0 + $0x8] ss:$16 sps:$4 sm:$0xff]  }
  0x14   :  { %928 = vset.pattern.permute.xlu0 %v986_v0  ;;  %929 = vset.pattern.permute.xlu1 %v986_v0  ;;  %v48_v5 = vld [vmem:[%s1202_s3] sm:$0xf]  ;;  %s987_s0 = smov 112   ;;  %s989_s3 = smov 127   ;;  %v325_v24 = vld [vmem:[%s1204_s5 + $0x8] sm:$0xff]  ;;  %v182_v30 = vshrl.u32 %v172_v27, 7 }
  0x15   :  { %78 = vmatprep.subr.bf16.mxu0 %v930_v1  ;;  %119 = vmatprep.subr.bf16.mxu1 %v932_v2  ;;  %v43_v6 = vld [vmem:[%s1201_s2] sm:$0x3]  ;;  %s988_s2 = smov 111   ;;  %v173_v33 = vand.u32 127, %v172_v27  ;;  %vm309_vm3 = vcmask 1043456   ;;  %vm453_vm5 = vcmask 1041408  }
  0x16   :  { %79 = vmatpush1.bf16.msra.mxu0 %v934_v3  ;;  %120 = vmatpush1.bf16.msra.mxu1 %v935_v4  ;;  %v324_v25 = vld [vmem:[%s1204_s5] sm:$0xff]  ;;  %v191_v34 = vsub.s32 2, %v182_v30  ;;  %v195_v35 = vsub.s32 3, %v182_v30  ;;  %v183_v38 = vsub.s32 0, %v182_v30  ;;  %v187_v39 = vsub.s32 1, %v182_v30 }
  0x17   :  { %51 = vperm.xlu0 %928, %v48_v5   ;;  %v443_v26 = vld [vmem:[%s1206_s7] sm:$0xff]  ;;  %vm213_vm1 = vcmp.lt.s32.totalorder %v173_v33, 112  ;;  %vm174_vm2 = vcmp.lt.s32.totalorder %v173_v33, 111  ;;  %vm253_vm4 = vcmp.lt.s32.totalorder %v173_v33, 127  ;;  %vm449_vm6 = vcmask 31744  }
  0x18   :  { %v219_v36 = vld [vmem:[#allocation2 + $0x1] ss:$4 sm:$0xf]  ;;  %v179_v41 = vld [vmem:[#allocation2] ss:$4 sm:$0xf] }
  0x19   :  { %899 = vmatmul.mubr.msk.bf16.vlgmr.msra.gmra.mrb[0].mxu0 %vm74_vm0, %v43_v6  ;;  %900 = vmatmul.mubr.msk.bf16.vlgmr.msra.gmra.mrb[0].mxu1 %vm74_vm0, %v43_v6  ;;  %v232_v42 = vrot.slane %v219_v36, %v191_v34  ;;  %v236_v43 = vrot.slane %v219_v36, %v195_v35  ;;  %v184_v45 = vrot.slane %v179_v41, %v183_v38  ;;  %v259_v49 = vld [vmem:[#allocation2 + $0x2] ss:$4 sm:$0xf] }
  0x1a   :  { %376 = vmatprep.mubr.bf16.mxu0 %v986_v0  ;;  %419 = vmatprep.mubr.bf16.mxu1 %v986_v0  ;;  %v188_v46 = vrot.slane %v179_v41, %v187_v39  ;;  %v192_v51 = vrot.slane %v179_v41, %v191_v34  ;;  %v196_v52 = vrot.slane %v179_v41, %v195_v35 }
  0x1b   :  { %v224_v55 = vrot.slane %v219_v36, %v183_v38  ;;  %v228_v56 = vrot.slane %v219_v36, %v187_v39  ;;  %v264_v59 = vrot.slane %v259_v49, %v183_v38  ;;  %v268_v2 = vrot.slane %v259_v49, %v187_v39 }
  0x1c   :  { %v272_v6 = vrot.slane %v259_v49, %v191_v34 }
  0x96   :  { %v52_v7 = vpop.permute.xlu0 %51 }
  0xec   :  { %v112_v8 = vpop.f32.mrb[0].mxu0  ;;  %v153_v9 = vpop.f32.mrb[0].mxu1 }
  0xed   :  { %v113_v10 = vadd.f32 %v112_v8, %v52_v7  ;;  %v154_v11 = vadd.f32 %v153_v9, %v52_v7  ;;  %v114_v12 = vpop.f32.mrb[1].mxu0  ;;  %v155_v13 = vpop.f32.mrb[1].mxu1 }
  0xee   :  { %v116_v14 = vpop.f32.mrb[2].mxu0  ;;  %v157_v15 = vpop.f32.mrb[2].mxu1  ;;  %v156_v18 = vadd.f32 %v155_v13, %v52_v7  ;;  %v115_v21 = vadd.f32 %v114_v12, %v52_v7 }
  0xef   :  { %v1076_v16 = vmax.f32 %v113_v10, 0.0  ;;  %v1078_v17 = vmax.f32 %v154_v11, 0.0  ;;  %v117_v19 = vpop.f32.mrb[3].mxu0  ;;  %v158_v20 = vpop.f32.mrb[3].mxu1  ;;  %v276_v10 = vrot.slane %v259_v49, %v195_v35 }
  0xf0   :  { %v1082_v22 = vmax.f32 %v156_v18, 0.0  ;;  %v1086_v23 = vmax.f32 %v115_v21, 0.0 }
  0xf1   :  { %209 = vrot.lane.b32.xlu1 %v1078_v17, %s987_s0  ;;  %205 = vrot.lane.b32.xlu0 %v1076_v16, %s987_s0  ;;  %v303_v53 = vrot.slane %v1078_v17, 4  ;;  %v301_v30 = vrot.slane %v1076_v16, 4 }
  0xf2   :  { %v302_v54 = vrot.slane %v1086_v23, 4  ;;  %v304_v57 = vrot.slane %v1082_v22, 4 }
  0xf5   :  { %164 = vrot.lane.b32.xlu1 %v1076_v16, %s988_s2  ;;  %211 = vrot.lane.b32.xlu0 %v1082_v22, %s987_s0 }
  0xf9   :  { %168 = vrot.lane.b32.xlu1 %v1078_v17, %s988_s2  ;;  %166 = vrot.lane.b32.xlu0 %v1086_v23, %s988_s2 }
  0xfd   :  { %245 = vrot.lane.b32.xlu1 %v1076_v16, %s989_s3  ;;  %170 = vrot.lane.b32.xlu0 %v1082_v22, %s988_s2 }
 0x101   :  { %207 = vrot.lane.b32.xlu1 %v1086_v23, %s987_s0  ;;  %247 = vrot.lane.b32.xlu0 %v1086_v23, %s989_s3 }
 0x105   :  { %249 = vrot.lane.b32.xlu1 %v1078_v17, %s989_s3  ;;  %251 = vrot.lane.b32.xlu0 %v1082_v22, %s989_s3 }
 0x109   :  { %333 = vperm.xlu0 %928, %v325_v24   ;;  %328 = vperm.xlu1 %929, %v324_v25  }
 0x10d   :  { %446 = vperm.xlu1 %929, %v443_v26  }
 0x163   :  { %v210_v28 = vpop.permute.xlu1 %209  ;;  %v206_v29 = vpop.permute.xlu0 %205 }
 0x167   :  { %v165_v31 = vpop.permute.xlu1 %164  ;;  %v212_v32 = vpop.permute.xlu0 %211 }
 0x168   :  { %v214_v44 = vsel %vm213_vm1, %v210_v28, %v212_v32  ;;  %v217_v50 = vsel %vm213_vm1, %v212_v32, %v206_v29 }
 0x169   :  { %v243_v58 = vmul.f32 %v232_v42, %v214_v44  ;;  %v244_v60 = vmul.f32 %v236_v43, %v217_v50  ;;  %v936_v42 = vld [vmem:[%s1203_s4] sm:$0xff]  }
 0x16b   :  { %v169_v37 = vpop.permute.xlu1 %168  ;;  %v167_v40 = vpop.permute.xlu0 %166  ;;  %v291_v11 = vrot.slane %v243_v58, 4  ;;  %v292_v15 = vrot.slane %v244_v60, 4 }
 0x16c   :  { %v177_v3 = vsel %vm174_vm2, %v165_v31, %v167_v40  ;;  %v176_v12 = vsel %vm174_vm2, %v167_v40, %v169_v37 }
 0x16d   :  { %v201_v17 = vmul.f32 %v184_v45, %v177_v3  ;;  %v202_v26 = vmul.f32 %v188_v46, %v176_v12 }
 0x16f   :  { %v246_v47 = vpop.permute.xlu1 %245  ;;  %v171_v48 = vpop.permute.xlu0 %170 }
 0x170   :  { %v175_v61 = vsel %vm174_vm2, %v169_v37, %v171_v48  ;;  %v178_v62 = vsel %vm174_vm2, %v171_v48, %v165_v31 }
 0x171   :  { %v203_v13 = vmul.f32 %v192_v51, %v175_v61  ;;  %v204_v14 = vmul.f32 %v196_v52, %v178_v62 }
 0x173   :  { %v208_v63 = vpop.permute.xlu1 %207  ;;  %v248_v1 = vpop.permute.xlu0 %247  ;;  %v312_v31 = vsel %vm309_vm3, %v203_v13, %v291_v11  ;;  %v313_v34 = vsel %vm309_vm3, %v204_v14, %v292_v15 }
 0x174   :  { %v215_v4 = vsel %vm213_vm1, %v208_v63, %v210_v28  ;;  %v216_v5 = vsel %vm213_vm1, %v206_v29, %v208_v63  ;;  %v256_v9 = vsel %vm253_vm4, %v246_v47, %v248_v1 }
 0x175   :  { %v241_v7 = vmul.f32 %v224_v55, %v216_v5  ;;  %v242_v8 = vmul.f32 %v228_v56, %v215_v4  ;;  %v281_v22 = vmul.f32 %v264_v59, %v256_v9 }
 0x177   :  { %v289_v18 = vrot.slane %v241_v7, 4  ;;  %v290_v19 = vrot.slane %v242_v8, 4  ;;  %v250_v20 = vpop.permute.xlu1 %249  ;;  %v252_v21 = vpop.permute.xlu0 %251  ;;  %v314_v38 = vsel %vm309_vm3, %v281_v22, %v301_v30 }
 0x178   :  { %v255_v23 = vsel %vm253_vm4, %v248_v1, %v250_v20  ;;  %v254_v24 = vsel %vm253_vm4, %v250_v20, %v252_v21  ;;  %v257_v25 = vsel %vm253_vm4, %v252_v21, %v246_v47 }
 0x179   :  { %v282_v27 = vmul.f32 %v268_v2, %v255_v23  ;;  %v283_v28 = vmul.f32 %v272_v6, %v254_v24  ;;  %v284_v29 = vmul.f32 %v276_v10, %v257_v25  ;;  %v310_v32 = vsel %vm309_vm3, %v201_v17, %v289_v18  ;;  %v442_v17 = vld [vmem:[%s1205_s6] sm:$0xf]  ;;  %s990_s6 = smov [#allocation5]  }
 0x17a   :  { %v311_v36 = vsel %vm309_vm3, %v202_v26, %v290_v19  ;;  %v318_v16 = vpack.c.bf16 %v314_v38, %v310_v32  ;;  %s883_s13 = sshll.u32 %s990_s6, 4  ;;  %s884_s13 = int_to_ptr.vmem [resolvable:$true] %s883_s13 }
 0x17b   :  { %v316_v35 = vsel %vm309_vm3, %v283_v28, %v303_v53  ;;  %v315_v37 = vsel %vm309_vm3, %v282_v27, %v302_v54  ;;  %v317_v33 = vsel %vm309_vm3, %v284_v29, %v304_v57  ;;  %s959_s14 = scalar_lea.vmem %s884_s13, 2048  ;;  %p964_p9 = scmp.lt.s32.totalorder %s884_s13, %s884_s13 }
 0x17c   :  { %v319_v39 = vpack.c.bf16 %v315_v37, %v311_v36  ;;  %v321_v40 = vpack.c.bf16 %v317_v33, %v313_v34  ;;  %v320_v41 = vpack.c.bf16 %v316_v35, %v312_v31  ;;  %p960_p8 = scmp.ne.s32.totalorder %s884_s13, %s959_s14  ;;  %p965_p10 = scmp.lt.s32.totalorder %s959_s14, %s959_s14 }
 0x17e   :  { %344 = vmatprep.subr.bf16.mxu0 %v319_v39  ;;  %387 = vmatprep.subr.bf16.mxu1 %v321_v40  ;;  %p966_p11 = por %p965_p10, %p964_p9 }
 0x17f   :  { %345 = vmatpush1.bf16.msra.mxu0 %v318_v16  ;;  %388 = vmatpush1.bf16.msra.mxu1 %v320_v41 }
 0x180   :  { %p967_p12 = pnand %p966_p11, %p960_p8 }
 0x182   :  { %902 = vmatmul.mubr.msk.bf16.vlgmr.msra.gmra.mrb[4].mxu0 %vm74_vm0, %v936_v42  ;;  %903 = vmatmul.mubr.msk.bf16.vlgmr.msra.gmra.mrb[4].mxu1 %vm74_vm0, %v936_v42 }
 0x183   :  { %498 = vmatprep.mubr.bf16.mxu0 %v986_v0  ;;  %539 = vmatprep.mubr.bf16.mxu1 %v986_v0 }
 0x188   :  { %v329_v43 = vpop.permute.xlu1 %328  ;;  %v334_v44 = vpop.permute.xlu0 %333 }
 0x18c   :  { %v1169_v32 = vpop.permute.xlu1 %446 }
 0x255   :  { %v378_v45 = vpop.f32.mrb[4].mxu0  ;;  %v421_v46 = vpop.f32.mrb[4].mxu1 }
 0x256   :  { %v379_v47 = vadd.f32 %v378_v45, %v329_v43  ;;  %v422_v48 = vadd.f32 %v421_v46, %v329_v43  ;;  %v380_v49 = vpop.f32.mrb[5].mxu0  ;;  %v423_v50 = vpop.f32.mrb[5].mxu1 }
 0x257   :  { %v381_v51 = vadd.f32 %v380_v49, %v329_v43  ;;  %v424_v52 = vadd.f32 %v423_v50, %v329_v43  ;;  %v382_v53 = vpop.f32.mrb[6].mxu0  ;;  %v425_v54 = vpop.f32.mrb[6].mxu1 }
 0x258   :  { %v383_v55 = vadd.f32 %v382_v53, %v334_v44  ;;  %v426_v56 = vadd.f32 %v425_v54, %v334_v44  ;;  %v384_v57 = vpop.f32.mrb[7].mxu0  ;;  %v427_v58 = vpop.f32.mrb[7].mxu1  ;;  %v430_v61 = vmax.f32 %v379_v47, 0.0  ;;  %v432_v62 = vmax.f32 %v422_v48, 0.0 }
 0x259   :  { %v385_v59 = vadd.f32 %v384_v57, %v334_v44  ;;  %v428_v60 = vadd.f32 %v427_v58, %v334_v44  ;;  %v431_v2 = vmax.f32 %v381_v51, 0.0  ;;  %v433_v3 = vmax.f32 %v424_v52, 0.0 }
 0x25a   :  { %v434_v63 = vmax.f32 %v383_v55, 0.0  ;;  %v436_v1 = vmax.f32 %v426_v56, 0.0 }
 0x25b   :  { %v435_v4 = vmax.f32 %v385_v59, 0.0  ;;  %v437_v5 = vmax.f32 %v428_v60, 0.0 }
 0x25c   :  { %v438_v6 = vpack.c.bf16 %v434_v63, %v430_v61  ;;  %v440_v7 = vpack.c.bf16 %v436_v1, %v432_v62 }
 0x25d   :  { %v439_v8 = vpack.c.bf16 %v435_v4, %v431_v2  ;;  %v441_v9 = vpack.c.bf16 %v437_v5, %v433_v3 }
 0x25e   :  { %v455_v10 = vsel %vm453_vm5, %v438_v6, 0  ;;  %v461_v11 = vsel %vm453_vm5, %v440_v7, 0  ;;  %v560_v14 = vrot.slane %v438_v6, 2  ;;  %v562_v15 = vrot.slane %v440_v7, 2 }
 0x25f   :  { %904 = vmatprep.subr.msk.bf16.mxu0 %vm453_vm5, %v439_v8  ;;  %906 = vmatprep.subr.msk.bf16.mxu1 %vm453_vm5, %v441_v9  ;;  %v561_v12 = vrot.slane %v439_v8, 2  ;;  %v563_v13 = vrot.slane %v441_v9, 2  ;;  %v667_v20 = vrot.slane %v439_v8, 4  ;;  %v669_v21 = vrot.slane %v441_v9, 4 }
 0x260   :  { %467 = vmatpush1.bf16.msra.mxu0 %v455_v10  ;;  %508 = vmatpush1.bf16.msra.mxu1 %v461_v11  ;;  %v565_v18 = vsel %vm453_vm5, %v560_v14, 0  ;;  %v571_v19 = vsel %vm453_vm5, %v562_v15, 0  ;;  %v666_v22 = vrot.slane %v438_v6, 4  ;;  %v668_v23 = vrot.slane %v440_v7, 4 }
 0x261   :  { %908 = vmatprep.subr.msk.bf16.mxu0 %vm453_vm5, %v561_v12  ;;  %910 = vmatprep.subr.msk.bf16.mxu1 %vm453_vm5, %v563_v13  ;;  %v773_v26 = vrot.slane %v439_v8, 6  ;;  %v775_v27 = vrot.slane %v441_v9, 6  ;;  %v772_v28 = vrot.slane %v438_v6, 6  ;;  %v774_v29 = vrot.slane %v440_v7, 6 }
 0x262   :  { %v671_v24 = vsel %vm453_vm5, %v666_v22, 0  ;;  %v677_v25 = vsel %vm453_vm5, %v668_v23, 0 }
 0x263   :  { %905 = vmatmul.mubr.msk.bf16.vlgmr.msra.gmra.mrb[8].mxu0 %vm449_vm6, %v442_v17  ;;  %907 = vmatmul.mubr.msk.bf16.vlgmr.msra.gmra.mrb[8].mxu1 %vm449_vm6, %v442_v17  ;;  %v777_v30 = vsel %vm453_vm5, %v772_v28, 0  ;;  %v783_v31 = vsel %vm453_vm5, %v774_v29, 0 }
 0x264   :  { %577 = vmatpush1.bf16.msra.mxu0 %v565_v18  ;;  %618 = vmatpush1.bf16.msra.mxu1 %v571_v19 }
 0x265   :  { %912 = vmatprep.subr.msk.bf16.mxu0 %vm453_vm5, %v667_v20  ;;  %914 = vmatprep.subr.msk.bf16.mxu1 %vm453_vm5, %v669_v21 }
 0x266   :  { %608 = vmatprep.mubr.bf16.mxu0 %v986_v0  ;;  %649 = vmatprep.mubr.bf16.mxu1 %v986_v0 }
 0x26b   :  { %909 = vmatmul.mubr.msk.bf16.vlgmr.msra.gmra.mrb[12].mxu0 %vm449_vm6, %v442_v17  ;;  %911 = vmatmul.mubr.msk.bf16.vlgmr.msra.gmra.mrb[12].mxu1 %vm449_vm6, %v442_v17 }
 0x26c   :  { %683 = vmatpush1.bf16.msra.mxu0 %v671_v24  ;;  %724 = vmatpush1.bf16.msra.mxu1 %v677_v25 }
 0x26d   :  { %916 = vmatprep.subr.msk.bf16.mxu0 %vm453_vm5, %v773_v26  ;;  %918 = vmatprep.subr.msk.bf16.mxu1 %vm453_vm5, %v775_v27 }
 0x26e   :  { %714 = vmatprep.mubr.bf16.mxu0 %v986_v0  ;;  %755 = vmatprep.mubr.bf16.mxu1 %v986_v0 }
 0x273   :  { %913 = vmatmul.mubr.msk.bf16.vlgmr.msra.gmra.mrb[16].mxu0 %vm449_vm6, %v442_v17  ;;  %915 = vmatmul.mubr.msk.bf16.vlgmr.msra.gmra.mrb[16].mxu1 %vm449_vm6, %v442_v17 }
 0x274   :  { %789 = vmatpush1.bf16.msra.mxu0 %v777_v30  ;;  %830 = vmatpush1.bf16.msra.mxu1 %v783_v31 }
 0x275   :  { %820 = vmatprep.mubr.bf16.mxu0 %v986_v0  ;;  %861 = vmatprep.mubr.bf16.mxu1 %v986_v0 }
 0x27b   :  { %917 = vmatmul.mubr.msk.bf16.vlgmr.msra.gmra.mrb[20].mxu0 %vm449_vm6, %v442_v17  ;;  %919 = vmatmul.mubr.msk.bf16.vlgmr.msra.gmra.mrb[20].mxu1 %vm449_vm6, %v442_v17 }
 0x336   :  { %v500_v34 = vpop.f32.mrb[8].mxu0  ;;  %v541_v35 = vpop.f32.mrb[8].mxu1 }
 0x337   :  { %v501_v36 = vadd.f32 %v500_v34, %v1169_v32  ;;  %v542_v37 = vadd.f32 %v541_v35, %v1169_v32  ;;  %v502_v33 = vpop.f32.mrb[9].mxu0  ;;  %v543_v38 = vpop.f32.mrb[9].mxu1 }
 0x338   :  { %v503_v39 = vadd.f32 %v502_v33, %v1169_v32  ;;  %v544_v40 = vadd.f32 %v543_v38, %v1169_v32  ;;  %v504_v41 = vpop.f32.mrb[10].mxu0  ;;  %v545_v0 = vpop.f32.mrb[10].mxu1 }
 0x339   :  { %v548_v16 = vmax.f32 %v501_v36, 0.0  ;;  %v550_v42 = vmax.f32 %v542_v37, 0.0  ;;  %v505_v43 = vpop.f32.mrb[11].mxu0  ;;  %v546_v44 = vpop.f32.mrb[11].mxu1 }
 0x33a   :  { %v549_v45 = vmax.f32 %v503_v39, 0.0  ;;  %v551_v46 = vmax.f32 %v544_v40, 0.0 }
 0x33b   :  { %552 = vst [vmem:[#allocation5] sm:$0xff] %v548_v16  ;;  %554 = vst [vmem:[#allocation5 + $0x10] sm:$0xff] %v550_v42 }
 0x33c   :  { %553 = vst [vmem:[#allocation5 + $0x8] sm:$0xff] %v549_v45  ;;  %555 = vst [vmem:[#allocation5 + $0x18] sm:$0xff] %v551_v46 }
 0x33e   :  { %v610_v47 = vpop.f32.mrb[12].mxu0  ;;  %v651_v48 = vpop.f32.mrb[12].mxu1 }
 0x33f   :  { %v611_v49 = vadd.f32 %v610_v47, %v1169_v32  ;;  %v652_v50 = vadd.f32 %v651_v48, %v1169_v32  ;;  %v612_v51 = vpop.f32.mrb[13].mxu0  ;;  %v653_v52 = vpop.f32.mrb[13].mxu1 }
 0x340   :  { %v613_v53 = vadd.f32 %v612_v51, %v1169_v32  ;;  %v654_v54 = vadd.f32 %v653_v52, %v1169_v32  ;;  %v614_v55 = vpop.f32.mrb[14].mxu0  ;;  %v655_v56 = vpop.f32.mrb[14].mxu1 }
 0x341   :  { %v658_v57 = vmax.f32 %v611_v49, 0.0  ;;  %v660_v58 = vmax.f32 %v652_v50, 0.0  ;;  %v615_v59 = vpop.f32.mrb[15].mxu0  ;;  %v656_v60 = vpop.f32.mrb[15].mxu1 }
 0x342   :  { %v659_v61 = vmax.f32 %v613_v53, 0.0  ;;  %v661_v62 = vmax.f32 %v654_v54, 0.0 }
 0x343   :  { %662 = vst [vmem:[#allocation5 + $0x20] sm:$0xff] %v658_v57  ;;  %664 = vst [vmem:[#allocation5 + $0x30] sm:$0xff] %v660_v58 }
 0x344   :  { %663 = vst [vmem:[#allocation5 + $0x28] sm:$0xff] %v659_v61  ;;  %665 = vst [vmem:[#allocation5 + $0x38] sm:$0xff] %v661_v62 }
 0x346   :  { %v716_v63 = vpop.f32.mrb[16].mxu0  ;;  %v757_v1 = vpop.f32.mrb[16].mxu1 }
 0x347   :  { %v717_v2 = vadd.f32 %v716_v63, %v1169_v32  ;;  %v758_v3 = vadd.f32 %v757_v1, %v1169_v32  ;;  %v718_v4 = vpop.f32.mrb[17].mxu0  ;;  %v759_v5 = vpop.f32.mrb[17].mxu1 }
 0x348   :  { %v719_v6 = vadd.f32 %v718_v4, %v1169_v32  ;;  %v760_v7 = vadd.f32 %v759_v5, %v1169_v32  ;;  %v720_v8 = vpop.f32.mrb[18].mxu0  ;;  %v761_v9 = vpop.f32.mrb[18].mxu1 }
 0x349   :  { %v764_v10 = vmax.f32 %v717_v2, 0.0  ;;  %v766_v11 = vmax.f32 %v758_v3, 0.0  ;;  %v721_v12 = vpop.f32.mrb[19].mxu0  ;;  %v762_v13 = vpop.f32.mrb[19].mxu1 }
 0x34a   :  { %v765_v14 = vmax.f32 %v719_v6, 0.0  ;;  %v767_v15 = vmax.f32 %v760_v7, 0.0 }
 0x34b   :  { %768 = vst [vmem:[#allocation5 + $0x40] sm:$0xff] %v764_v10  ;;  %770 = vst [vmem:[#allocation5 + $0x50] sm:$0xff] %v766_v11 }
 0x34c   :  { %769 = vst [vmem:[#allocation5 + $0x48] sm:$0xff] %v765_v14  ;;  %771 = vst [vmem:[#allocation5 + $0x58] sm:$0xff] %v767_v15 }
 0x34e   :  { %v822_v17 = vpop.f32.mrb[20].mxu0  ;;  %v863_v18 = vpop.f32.mrb[20].mxu1 }
 0x34f   :  { %v823_v19 = vadd.f32 %v822_v17, %v1169_v32  ;;  %v864_v20 = vadd.f32 %v863_v18, %v1169_v32  ;;  %v824_v21 = vpop.f32.mrb[21].mxu0  ;;  %v865_v22 = vpop.f32.mrb[21].mxu1 }
 0x350   :  { %v825_v23 = vadd.f32 %v824_v21, %v1169_v32  ;;  %v866_v24 = vadd.f32 %v865_v22, %v1169_v32  ;;  %v826_v25 = vpop.f32.mrb[22].mxu0  ;;  %v867_v26 = vpop.f32.mrb[22].mxu1 }
 0x351   :  { %v870_v27 = vmax.f32 %v823_v19, 0.0  ;;  %v872_v28 = vmax.f32 %v864_v20, 0.0  ;;  %v827_v29 = vpop.f32.mrb[23].mxu0  ;;  %v868_v30 = vpop.f32.mrb[23].mxu1 }
 0x352   :  { %v871_v31 = vmax.f32 %v825_v23, 0.0  ;;  %v873_v34 = vmax.f32 %v866_v24, 0.0 }
 0x353   :  { %874 = vst [vmem:[#allocation5 + $0x60] sm:$0xff] %v870_v27  ;;  %876 = vst [vmem:[#allocation5 + $0x70] sm:$0xff] %v872_v28 }
 0x354   :  { %875 = vst [vmem:[#allocation5 + $0x68] sm:$0xff] %v871_v31  ;;  %877 = vst [vmem:[#allocation5 + $0x78] sm:$0xff] %v873_v34 }
 0x355   :  { %970 = shalt.err (!%p967_p12)
}
 0x356   :  { %s971_s17 = scalar_lea.hbm %s1207_s8, 2048 }
 0x357   :  { %p972_p13 = scmp.ne.s32.totalorder %s1207_s8, %s971_s17  ;;  %p975_p0 = scmp.lt.u32.totalorder %s971_s17, %s1207_s8 }
 0x359   :  { %p977_p1 = pnand %p975_p0, %p972_p13 }
 0x35b   :  { %980 = shalt.err (!%p977_p1)
}
 0x35c   :  { %s991_s21 = smov 512   ;;  %s992_s22 = smov 32  }
 0x35d   :  { %889 = dma.vmem_to_hbm [thread:$0]  %s884_s13, 2048, %s1207_s8, [#allocation4], %s991_s21, %s991_s21, %s992_s22  }
 0x35e   :  { %983 = dma.done.wait [#allocation4], 2048  }
 0x35f   :  { %984 = vsyncadd [#allocation4], 4294965248 }
 0x360   :  { %893 = vsyncpa [#allocation3], 1 }
 0x361   :  { %894 = vsyncpa [#allocation4], 1 }

</bundles_post_ra>
